<compile_context>
chip_gen: v6e
topology: v6e:2x2x1
jax: 0.10.0
libtpu: 0.0.40
codegen_flags: <defaults>
</compile_context>

<pallas_src>
import functools
import math

import jax
import jax.numpy as jnp
from jax.experimental import pallas as pl
from jax.experimental.pallas import tpu as pltpu


def _ru(x, m):
    return ((x + m - 1) // m) * m


def _pad2(x, rows, cols):
    r = rows - x.shape[0]
    c = cols - x.shape[1]
    if r == 0 and c == 0:
        return x            # no-copy fast path (avoids an extra HBM pass)
    return jnp.pad(x, ((0, r), (0, c)))


# ----------------------------- Pallas kernels -----------------------------

def _make_mm_kernel(relu, with_res):
    """Fused (A @ B) * scale + bias [+ residual] [-> relu], f32 accumulator."""
    def kernel(*refs):
        if with_res:
            a_ref, b_ref, s_ref, bi_ref, r_ref, o_ref, acc_ref = refs
        else:
            a_ref, b_ref, s_ref, bi_ref, o_ref, acc_ref = refs
            r_ref = None
        k = pl.program_id(2)

        @pl.when(k == 0)
        def _():
            acc_ref[...] = jnp.zeros_like(acc_ref)

        acc_ref[...] += jnp.dot(a_ref[...], b_ref[...],
                                preferred_element_type=jnp.float32)

        @pl.when(k == pl.num_programs(2) - 1)
        def _():
            # epilogue kept in f32 (v5e VPU has no bf16 path)
            y = acc_ref[...] * s_ref[...] + bi_ref[...]
            if r_ref is not None:
                y = y + r_ref[...].astype(jnp.float32)
            if relu:
                y = jnp.maximum(y, 0.0)
            o_ref[...] = y.astype(o_ref.dtype)

    return kernel


def _global_pool_kernel(x_ref, avg_ref, max_ref):
    x = x_ref[...].astype(jnp.float32)        # (N, HW, tc)
    avg_ref[...] = jnp.mean(x, axis=1)        # adaptive avg pool -> (N, tc)
    max_ref[...] = jnp.max(x, axis=1)         # adaptive max pool -> (N, tc)


def _cbam_mlp_kernel(avg_ref, max_ref, w1_ref, w2_ref, wc_ref, s_ref):
    # shared channel MLP on avg- and max-pooled descriptors + final 1x1 conv
    a = jnp.maximum(jnp.dot(avg_ref[...], w1_ref[...],
                            preferred_element_type=jnp.float32), 0.0)
    a = jnp.dot(a, w2_ref[...], preferred_element_type=jnp.float32)
    m = jnp.maximum(jnp.dot(max_ref[...], w1_ref[...],
                            preferred_element_type=jnp.float32), 0.0)
    m = jnp.dot(m, w2_ref[...], preferred_element_type=jnp.float32)
    out = a + m                                             # (N, C)
    s_ref[...] = jnp.sum(out * wc_ref[...], axis=1, keepdims=True)  # (N, 1)


def _scale_sigmoid_kernel(x_ref, s_ref, o_ref):
    # spec: out = sigmoid(conv1(out) * x) -- per-sample scalar gate, output
    # REPLACES x (this matches the given PyTorch CBAM module exactly).
    x = x_ref[...].astype(jnp.float32)
    o_ref[...] = jax.nn.sigmoid(x * s_ref[...]).astype(o_ref.dtype)


def _max9_kernel(x_ref, o_ref):
    # 3x3 max-pool: max over the 9 pre-shifted taps (block of rows)
    o_ref[...] = jnp.max(x_ref[...].astype(jnp.float32), axis=0).astype(o_ref.dtype)


# ------------------------------ wrappers -----------------------------------

@functools.partial(jax.jit, static_argnames=("relu", "out_dtype"))
def matmul_bn_act(a, b, scale, bias, residual=None, *, relu=False,
                  out_dtype=jnp.float32):
    M, K = a.shape
    N = b.shape[1]

    # Adaptive tiles: tm <= 256 rows, lane-dense tn (128/256), tk matched to K
    Mp = _ru(M, 8)
    tm = min(Mp, 256)
    Mp = _ru(Mp, tm)

    Np = _ru(N, 128)
    tn = 256 if Np % 256 == 0 else 128

    Kp = _ru(K, 128)
    tk = 128
    for cand in (512, 384, 256, 128):
        if Kp % cand == 0:
            tk = cand
            break

    # bf16 MXU inputs, f32 accumulator / epilogue
    a_p = _pad2(a.astype(jnp.bfloat16), Mp, Kp)
    b_p = _pad2(b.astype(jnp.bfloat16), Kp, Np)
    s_p = _pad2(scale.reshape(1, N).astype(jnp.float32), 1, Np)
    bi_p = _pad2(bias.reshape(1, N).astype(jnp.float32), 1, Np)

    with_res = residual is not None
    inputs = [a_p, b_p, s_p, bi_p]
    in_specs = [
        pl.BlockSpec((tm, tk), lambda i, j, k: (i, k)),
        pl.BlockSpec((tk, tn), lambda i, j, k: (k, j)),
        pl.BlockSpec((1, tn), lambda i, j, k: (0, j)),
        pl.BlockSpec((1, tn), lambda i, j, k: (0, j)),
    ]
    if with_res:
        inputs.append(_pad2(residual, Mp, Np))
        in_specs.append(pl.BlockSpec((tm, tn), lambda i, j, k: (i, j)))

    out_isize = 2 if out_dtype == jnp.bfloat16 else 4
    bytes_accessed = (a_p.size * a_p.dtype.itemsize
                      + b_p.size * b_p.dtype.itemsize
                      + Mp * Np * out_isize
                      + (inputs[4].size * inputs[4].dtype.itemsize
                         if with_res else 0))

    out = pl.pallas_call(
        _make_mm_kernel(relu, with_res),
        out_shape=jax.ShapeDtypeStruct((Mp, Np), out_dtype),
        grid_spec=pltpu.PrefetchScalarGridSpec(
            num_scalar_prefetch=0,
            grid=(Mp // tm, Np // tn, Kp // tk),
            in_specs=in_specs,
            out_specs=pl.BlockSpec((tm, tn), lambda i, j, k: (i, j)),
            scratch_shapes=[pltpu.VMEM((tm, tn), jnp.float32)]),
        compiler_params=pltpu.CompilerParams(
            dimension_semantics=("parallel", "parallel", "arbitrary")),
        cost_estimate=pl.CostEstimate(flops=2 * Mp * Np * Kp,
                                      transcendentals=0,
                                      bytes_accessed=bytes_accessed),
    )(*inputs)
    if Mp == M and Np == N:
        return out
    return out[:M, :N]


def _im2col(x, kh, kw, stride, pad):
    # TODO(synk): fuse the 3x3 tap gather into the matmul kernel (halo windows
    # via manual DMA) to avoid materializing the 9x-wide im2col matrix in HBM;
    # bf16 activations already halve this traffic versus the previous version.
    N, H, W, C = x.shape
    xp = jnp.pad(x, ((0, 0), (pad, pad), (pad, pad), (0, 0)))
    Ho = (H + 2 * pad - kh) // stride + 1
    Wo = (W + 2 * pad - kw) // stride + 1
    cols = []
    for i in range(kh):
        for j in range(kw):
            cols.append(jax.lax.slice(
                xp, (0, i, j, 0),
                (N, i + (Ho - 1) * stride + 1, j + (Wo - 1) * stride + 1, C),
                (1, stride, stride, 1)))
    if len(cols) == 1:
        return cols[0], Ho, Wo
    return jnp.concatenate(cols, axis=-1), Ho, Wo


@functools.partial(jax.jit, static_argnames=("kh", "kw", "stride", "pad", "relu"))
def conv_bn(x, w, scale, bias, residual=None, *, kh, kw, stride, pad, relu):
    N, H, W, C = x.shape
    cols, Ho, Wo = _im2col(x, kh, kw, stride, pad)
    a = cols.reshape(N * Ho * Wo, kh * kw * C)
    cout = w.shape[1]
    r = residual.reshape(N * Ho * Wo, cout) if residual is not None else None
    y = matmul_bn_act(a, w, scale, bias, r, relu=relu, out_dtype=jnp.bfloat16)
    return y.reshape(N, Ho, Wo, cout)


@jax.jit
def maxpool_3x3_s2_p1(x):
    N, H, W, C = x.shape
    Ho = (H + 2 - 3) // 2 + 1
    Wo = (W + 2 - 3) // 2 + 1
    xp = jnp.pad(x, ((0, 0), (1, 1), (1, 1), (0, 0)),
                 constant_values=-jnp.inf)
    slices = []
    for i in range(3):
        for j in range(3):
            slices.append(jax.lax.slice(
                xp, (0, i, j, 0),
                (N, i + (Ho - 1) * 2 + 1, j + (Wo - 1) * 2 + 1, C),
                (1, 2, 2, 1)))
    R = N * Ho * Wo
    stacked = jnp.stack(slices, axis=0).reshape(9, R, C)
    tr = min(_ru(R, 8), 512)
    Rp = _ru(R, tr)
    if Rp != R:
        stacked = jnp.pad(stacked, ((0, 0), (0, Rp - R), (0, 0)))
    out = pl.pallas_call(
        _max9_kernel,
        out_shape=jax.ShapeDtypeStruct((Rp, C), x.dtype),
        grid_spec=pltpu.PrefetchScalarGridSpec(
            num_scalar_prefetch=0,
            grid=(Rp // tr,),
            in_specs=[pl.BlockSpec((9, tr, C), lambda i: (0, i, 0))],
            out_specs=pl.BlockSpec((tr, C), lambda i: (i, 0))),
        compiler_params=pltpu.CompilerParams(dimension_semantics=("parallel",)),
    )(stacked)
    return out[:R].reshape(N, Ho, Wo, C)


@jax.jit
def global_pool(x):
    # adaptive avg + max pool to 1x1, gridded over lane-dense channel tiles
    N, H, W, C = x.shape
    xf = x.reshape(N, H * W, C)
    tc = C if C <= 512 else 512            # C is a multiple of 128 here
    return pl.pallas_call(
        _global_pool_kernel,
        out_shape=(jax.ShapeDtypeStruct((N, C), jnp.float32),
                   jax.ShapeDtypeStruct((N, C), jnp.float32)),
        grid_spec=pltpu.PrefetchScalarGridSpec(
            num_scalar_prefetch=0,
            grid=(C // tc,),
            in_specs=[pl.BlockSpec((N, H * W, tc), lambda c: (0, 0, c))],
            out_specs=(pl.BlockSpec((N, tc), lambda c: (0, c)),
                       pl.BlockSpec((N, tc), lambda c: (0, c)))),
        compiler_params=pltpu.CompilerParams(dimension_semantics=("parallel",)),
    )(xf)


@jax.jit
def cbam_apply(x, w1, w2, wc):
    N, H, W, C = x.shape
    avg, mx = global_pool(x)
    s = pl.pallas_call(
        _cbam_mlp_kernel,
        out_shape=jax.ShapeDtypeStruct((N, 1), jnp.float32),
    )(avg, mx, w1, w2, wc)
    xf = x.reshape(N, H * W, C)
    tc = C if C <= 512 else 512
    out = pl.pallas_call(
        _scale_sigmoid_kernel,
        out_shape=jax.ShapeDtypeStruct((N, H * W, C), x.dtype),
        grid_spec=pltpu.PrefetchScalarGridSpec(
            num_scalar_prefetch=0,
            grid=(C // tc,),
            in_specs=[pl.BlockSpec((N, H * W, tc), lambda c: (0, 0, c)),
                      pl.BlockSpec((N, 1, 1), lambda c: (0, 0, 0))],
            out_specs=pl.BlockSpec((N, H * W, tc), lambda c: (0, 0, c))),
        compiler_params=pltpu.CompilerParams(dimension_semantics=("parallel",)),
    )(xf, s.reshape(N, 1, 1))
    return out.reshape(N, H, W, C)


# ------------------------------ parameters ---------------------------------

def _conv_w(key, kh, kw, cin, cout):
    fan_in = kh * kw * cin
    w = (jax.random.normal(key, (kh * kw * cin, cout), jnp.float32)
         * math.sqrt(2.0 / fan_in))
    return w.astype(jnp.bfloat16)          # bf16 weights for the MXU path


def _bn(key, c, eps=1e-5):
    k1, k2 = jax.random.split(key)
    gamma = 1.0 + 0.1 * jax.random.normal(k1, (c,), jnp.float32)
    beta = 0.1 * jax.random.normal(k2, (c,), jnp.float32)
    running_mean = jnp.zeros((c,), jnp.float32)
    running_var = jnp.ones((c,), jnp.float32)
    scale = gamma / jnp.sqrt(running_var + eps)
    bias = beta - running_mean * scale
    return scale, bias


def init_params(key, num_classes=10):
    counter = [0]

    def nk():
        counter[0] += 1
        return jax.random.fold_in(key, counter[0])

    p = {}
    p['conv1_w'] = _conv_w(nk(), 7, 7, 3, 64)
    p['bn1_s'], p['bn1_b'] = _bn(nk(), 64)

    cfg = [(3, 64), (4, 128), (6, 256), (3, 512)]   # ResNet-50 bottleneck config
    layers = []
    cin = 64
    for (nblocks, width) in cfg:
        blocks = []
        for b in range(nblocks):
            blk = {}
            blk['w1'] = _conv_w(nk(), 1, 1, cin, width)
            blk['s1'], blk['b1'] = _bn(nk(), width)
            blk['w2'] = _conv_w(nk(), 3, 3, width, width)
            blk['s2'], blk['b2'] = _bn(nk(), width)
            blk['w3'] = _conv_w(nk(), 1, 1, width, width * 4)
            blk['s3'], blk['b3'] = _bn(nk(), width * 4)
            if b == 0:   # torchvision: downsample on first block of each layer
                blk['wd'] = _conv_w(nk(), 1, 1, cin, width * 4)
                blk['sd'], blk['bd'] = _bn(nk(), width * 4)
            blocks.append(blk)
            cin = width * 4
        layers.append(blocks)
    p['layers'] = layers

    cbams = []
    for c in (256, 512, 1024, 2048):
        cr = c // 16
        cbams.append({
            'w1': jax.random.normal(nk(), (c, cr), jnp.float32) * math.sqrt(2.0 / c),
            'w2': jax.random.normal(nk(), (cr, c), jnp.float32) * math.sqrt(2.0 / cr),
            'wc': jax.random.normal(nk(), (1, c), jnp.float32) * math.sqrt(1.0 / c),
        })
    p['cbams'] = cbams

    p['fc_w'] = (jax.random.normal(nk(), (2048, num_classes), jnp.float32)
                 * math.sqrt(1.0 / 2048)).astype(jnp.bfloat16)
    p['fc_b'] = 0.01 * jax.random.normal(nk(), (num_classes,), jnp.float32)
    return p


# ------------------------------- forward -----------------------------------

def bottleneck(x, blk, stride):
    identity = x
    out = conv_bn(x, blk['w1'], blk['s1'], blk['b1'],
                  kh=1, kw=1, stride=1, pad=0, relu=True)
    out = conv_bn(out, blk['w2'], blk['s2'], blk['b2'],
                  kh=3, kw=3, stride=stride, pad=1, relu=True)
    if 'wd' in blk:
        identity = conv_bn(x, blk['wd'], blk['sd'], blk['bd'],
                           kh=1, kw=1, stride=stride, pad=0, relu=False)
    # residual add + final ReLU fused into the third conv's epilogue
    out = conv_bn(out, blk['w3'], blk['s3'], blk['b3'], identity,
                  kh=1, kw=1, stride=1, pad=0, relu=True)
    return out


def resnet50_cbam_forward(x_nchw, params):
    # NCHW f32 -> NHWC bf16 once at the boundary
    x = jnp.transpose(x_nchw, (0, 2, 3, 1)).astype(jnp.bfloat16)
    x = conv_bn(x, params['conv1_w'], params['bn1_s'], params['bn1_b'],
                kh=7, kw=7, stride=2, pad=3, relu=True)
    x = maxpool_3x3_s2_p1(x)
    strides = (1, 2, 2, 2)
    for li in range(4):
        for bi, blk in enumerate(params['layers'][li]):
            x = bottleneck(x, blk, strides[li] if bi == 0 else 1)
        c = params['cbams'][li]
        x = cbam_apply(x, c['w1'], c['w2'], c['wc'])
    avg, _ = global_pool(x)                       # adaptive avg pool to 1x1
    num_classes = params['fc_w'].shape[1]
    logits = matmul_bn_act(avg, params['fc_w'],
                           jnp.ones((num_classes,), jnp.float32),
                           params['fc_b'], relu=False, out_dtype=jnp.float32)
    return logits


if __name__ == "__main__":
    num_classes = 10
    x = jax.random.normal(jax.random.PRNGKey(0), (2, 3, 32, 32), jnp.float32)
    params = init_params(jax.random.PRNGKey(1), num_classes=num_classes)
    logits = resnet50_cbam_forward(x, params)
    logits = jax.block_until_ready(logits)
    assert logits.shape == (2, num_classes)
    assert bool(jnp.all(jnp.isfinite(logits)))
    print("KERNEL_OK")
</pallas_src>

<mosaic_0001>
module attributes {stable_mosaic.version = 11 : i64} {
  func.func @kernel(%arg0: i32, %arg1: i32, %arg2: i32, %arg3: memref<256x256xbf16, #tpu.memory_space<vmem>>, %arg4: memref<256x128xbf16, #tpu.memory_space<vmem>>, %arg5: memref<1x128xf32, #tpu.memory_space<vmem>>, %arg6: memref<1x128xf32, #tpu.memory_space<vmem>>, %arg7: memref<256x128xbf16, #tpu.memory_space<vmem>>, %arg8: memref<256x128xf32, #tpu.memory_space<vmem>>) attributes {dimension_semantics = [#tpu.dimension_semantics<parallel>, #tpu.dimension_semantics<parallel>, #tpu.dimension_semantics<arbitrary>], iteration_bounds = array<i64: 2, 1, 1>, scalar_prefetch = 0 : i64, scratch_operands = 1 : i64, tpu.core_type = #tpu.core_type<tc>, window_params = [{transform_indices = @transform_0, window_bounds = array<i64: 256, 256>}, {transform_indices = @transform_1, window_bounds = array<i64: 256, 128>}, {transform_indices = @transform_2, window_bounds = array<i64: 1, 128>}, {transform_indices = @transform_3, window_bounds = array<i64: 1, 128>}, {transform_indices = @transform_4, window_bounds = array<i64: 256, 128>}]} {
    %c0_i32 = arith.constant 0 : i32
    %0 = arith.cmpi eq, %arg2, %c0_i32 : i32
    %1 = arith.extui %0 : i1 to i32
    %c0_i32_0 = arith.constant 0 : i32
    %2 = arith.cmpi ne, %1, %c0_i32_0 : i32
    scf.if %2 {
      %cst_10 = arith.constant 0.000000e+00 : f32
      %12 = vector.broadcast %cst_10 : f32 to vector<256x128xf32>
      %c0_11 = arith.constant 0 : index
      %c0_12 = arith.constant 0 : index
      %13 = vector.load %arg8[%c0_11, %c0_12] : memref<256x128xf32, #tpu.memory_space<vmem>>, vector<256x128xf32>
      tpu.vector_store %arg8[%c0_11, %c0_12], %12 {strides = array<i32>} : memref<256x128xf32, #tpu.memory_space<vmem>>, vector<256x128xf32>,
    } else {
    }
    %c0 = arith.constant 0 : index
    %c0_1 = arith.constant 0 : index
    %3 = vector.load %arg8[%c0, %c0_1] : memref<256x128xf32, #tpu.memory_space<vmem>>, vector<256x128xf32>
    %c0_2 = arith.constant 0 : index
    %c0_3 = arith.constant 0 : index
    %4 = vector.load %arg3[%c0_2, %c0_3] : memref<256x256xbf16, #tpu.memory_space<vmem>>, vector<256x256xbf16>
    %c0_4 = arith.constant 0 : index
    %c0_5 = arith.constant 0 : index
    %5 = vector.load %arg4[%c0_4, %c0_5] : memref<256x128xbf16, #tpu.memory_space<vmem>>, vector<256x128xbf16>
    %cst = arith.constant dense<0.000000e+00> : vector<256x128xf32>
    %6 = tpu.matmul %4, %5, %cst {dimension_numbers = #tpu.dot_dimension_numbers<[1], [0], [0], [1], [0, 0, 1, 1], [], []>} : vector<256x256xbf16>, vector<256x128xbf16>, vector<256x128xf32> -> vector<256x128xf32>
    %7 = arith.addf %3, %6 : vector<256x128xf32>
    %c0_6 = arith.constant 0 : index
    %c0_7 = arith.constant 0 : index
    %8 = vector.load %arg8[%c0_6, %c0_7] : memref<256x128xf32, #tpu.memory_space<vmem>>, vector<256x128xf32>
    tpu.vector_store %arg8[%c0_6, %c0_7], %7 {strides = array<i32>} : memref<256x128xf32, #tpu.memory_space<vmem>>, vector<256x128xf32>,
    %c0_i32_8 = arith.constant 0 : i32
    %9 = arith.cmpi eq, %arg2, %c0_i32_8 : i32
    %10 = arith.extui %9 : i1 to i32
    %c0_i32_9 = arith.constant 0 : i32
    %11 = arith.cmpi ne, %10, %c0_i32_9 : i32
    scf.if %11 {
      %c0_10 = arith.constant 0 : index
      %c0_11 = arith.constant 0 : index
      %12 = vector.load %arg8[%c0_10, %c0_11] : memref<256x128xf32, #tpu.memory_space<vmem>>, vector<256x128xf32>
      %c0_12 = arith.constant 0 : index
      %c0_13 = arith.constant 0 : index
      %13 = vector.load %arg5[%c0_12, %c0_13] : memref<1x128xf32, #tpu.memory_space<vmem>>, vector<1x128xf32>
      %14 = vector.broadcast %13 : vector<1x128xf32> to vector<256x128xf32>
      %15 = arith.mulf %12, %14 : vector<256x128xf32>
      %c0_14 = arith.constant 0 : index
      %c0_15 = arith.constant 0 : index
      %16 = vector.load %arg6[%c0_14, %c0_15] : memref<1x128xf32, #tpu.memory_space<vmem>>, vector<1x128xf32>
      %17 = vector.broadcast %16 : vector<1x128xf32> to vector<256x128xf32>
      %18 = arith.addf %15, %17 : vector<256x128xf32>
      %cst_16 = arith.constant 0.000000e+00 : f32
      %19 = vector.broadcast %cst_16 : f32 to vector<256x128xf32>
      %20 = arith.maximumf %18, %19 : vector<256x128xf32>
      %21 = arith.truncf %20 : vector<256x128xf32> to vector<256x128xbf16>
      %c0_17 = arith.constant 0 : index
      %c0_18 = arith.constant 0 : index
      %22 = vector.load %arg7[%c0_17, %c0_18] : memref<256x128xbf16, #tpu.memory_space<vmem>>, vector<256x128xbf16>
      tpu.vector_store %arg7[%c0_17, %c0_18], %21 {strides = array<i32>} : memref<256x128xbf16, #tpu.memory_space<vmem>>, vector<256x128xbf16>,
    } else {
    }
    return
  }
  func.func @transform_0(%arg0: i32, %arg1: i32, %arg2: i32) -> (i32, i32) {
    %c0_i32 = arith.constant 0 : i32
    return %arg0, %arg2 : i32, i32
  }
  func.func @transform_1(%arg0: i32, %arg1: i32, %arg2: i32) -> (i32, i32) {
    %c0_i32 = arith.constant 0 : i32
    return %arg2, %arg1 : i32, i32
  }
  func.func @transform_2(%arg0: i32, %arg1: i32, %arg2: i32) -> (i32, i32) {
    %c0_i32 = arith.constant 0 : i32
    %c0_i32_0 = arith.constant 0 : i32
    return %c0_i32, %arg1 : i32, i32
  }
  func.func @transform_3(%arg0: i32, %arg1: i32, %arg2: i32) -> (i32, i32) {
    %c0_i32 = arith.constant 0 : i32
    %c0_i32_0 = arith.constant 0 : i32
    return %c0_i32, %arg1 : i32, i32
  }
  func.func @transform_4(%arg0: i32, %arg1: i32, %arg2: i32) -> (i32, i32) {
    %c0_i32 = arith.constant 0 : i32
    return %arg0, %arg1 : i32, i32
  }
}

</mosaic_0001>

<bundles_post_ra>
// kernel: matmul_bn_act.1
= control target key start
LH: loop header
LB: loop body
LE: loop exit
PB: predicated region body
PF: predicated region fallthrough
CT: control target
= control target key end

     0   :  { %s1843_s15 = smov 0   ;;  %s1845_s16 = smov 0   ;;  %s2054_s0 = inlined_call_operand.vmem [shape: bf16[512,256], index: 0, kind: input, shape index: {}]   ;;  %s2055_s1 = inlined_call_operand.vmem [shape: bf16[256,128], index: 1, kind: input, shape index: {}]   ;;  %s2056_s2 = inlined_call_operand.vmem [shape: f32[1,128], index: 2, kind: input, shape index: {}]   ;;  %s2057_s3 = inlined_call_operand.vmem [shape: f32[1,128], index: 3, kind: input, shape index: {}]   ;;  %s2058_s4 = inlined_call_operand.vmem [shape: bf16[512,128], index: 4, kind: output, shape index: {}]  }
   0x1   :  { %s1847_s17 = smov 0  }
   0x2 LB: > { %s33_s18 = sadd.s32 1, %s1812_s16  ;;  %p1360_p0 = scmp.ge.s32.totalorder %s1816_s17, 1  ;;  %s1816_s17 = sphi %s1847_s17, %s14_s17   ;;  %s1812_s16 = sphi %s1845_s16, %s2060_s16   ;;  %s1808_s15 = sphi %s1843_s15, %s2059_s15  }
   0x3   : > { %p35_p1 = scmp.ge.s32.totalorder %s33_s18, 2  ;;  %p224_p2 = scmp.lt.s32.totalorder %s1816_s17, 3 }
   0x5   : > { %s2062_s18 = smov (%p35_p1, %s33_s18), 0  ;;  %p225_p3 = pnand %p1360_p0, %p224_p2 }
   0x6   : > { %s1361_s21 = sshll.u32 (!%p225_p3), %s1808_s15, 5 }
   0x7   : > { %228 = sbr.rel (%p225_p3) target bundleno = 311 (0x137), region = 36  ;;  %p274_p4 = scmp.lt.s32.totalorder (!%p225_p3), %s1361_s21, 63 }
   0xc   : > { %v1730_v0 = vld [vmem:[%s2055_s1 + $0x78] sm:$0xff]   ;;  %v1732_v2 = vld [vmem:[%s2055_s1 + $0x70] sm:$0xff]   ;;  %v1734_v4 = vld [vmem:[%s2055_s1 + $0x68] sm:$0xff]   ;;  %s2064_s21 = smov (!%p274_p4, %s1361_s21), 63 }
   0xd   : > { %v1731_v1 = vld [vmem:[%s2055_s1 + $0x38] sm:$0xff]   ;;  %1578 = vmatprep.subr.bf16.mxu0 %v1730_v0  ;;  %1690 = vmatprep.subr.bf16.mxu1 %v1730_v0  ;;  %v1733_v3 = vld [vmem:[%s2055_s1 + $0x30] sm:$0xff]   ;;  %v1735_v5 = vld [vmem:[%s2055_s1 + $0x28] sm:$0xff]   ;;  %s1450_s10 = sshll.u32 %s2064_s21, 3  ;;  %s1365_s12 = sshll.u32 %s2064_s21, 2 }
   0xe   : > { %1579 = vmatpush3.bf16.msra.mxu0 %v1731_v1  ;;  %1698 = vmatpush3.bf16.msra.mxu1 %v1731_v1  ;;  %v1736_v6 = vld [vmem:[%s2055_s1 + $0x60] sm:$0xff]   ;;  %v1738_v8 = vld [vmem:[%s2055_s1 + $0x58] sm:$0xff]   ;;  %s1894_s15 = scalar_lea.vmem %s2054_s0, %s1450_s10  ;;  %v1740_v10 = vld [vmem:[%s2055_s1 + $0x50] sm:$0xff]  }
   0xf   : > { %1580 = vmatprep.subr.bf16.mxu0 %v1732_v2  ;;  %1691 = vmatprep.subr.bf16.mxu1 %v1732_v2  ;;  %v1737_v7 = vld [vmem:[%s2055_s1 + $0x20] sm:$0xff]   ;;  %v1739_v9 = vld [vmem:[%s2055_s1 + $0x18] sm:$0xff]   ;;  %v1741_v13 = vld [vmem:[%s2055_s1 + $0x10] sm:$0xff]  }
  0x10   : > { %v1748_v11 = vld [vmem:[%s1894_s15 + $0x4] ss:$8 sps:$4 sm:$0xff]   ;;  %v1746_v18 = vld [vmem:[%s1894_s15] ss:$8 sps:$4 sm:$0xff]   ;;  %v1752_v20 = vld [vmem:[%s1894_s15 + $0x14] ss:$8 sps:$4 sm:$0xff]  }
  0x11   : > { %v1751_v12 = vld [vmem:[%s1894_s15 + $0x84] ss:$8 sps:$4 sm:$0xff]   ;;  %729 = vmatprep.mubr.bf16.mxu0 %v1748_v11  ;;  %v1749_v19 = vld [vmem:[%s1894_s15 + $0x80] ss:$8 sps:$4 sm:$0xff]   ;;  %v1754_v21 = vld [vmem:[%s1894_s15 + $0x94] ss:$8 sps:$4 sm:$0xff]  }
  0x12   : > { %1581 = vmatpush3.bf16.msra.mxu0 %v1733_v3  ;;  %1699 = vmatpush3.bf16.msra.mxu1 %v1733_v3  ;;  %v1742_v14 = vld [vmem:[%s2055_s1 + $0x48] sm:$0xff]   ;;  %v1744_v16 = vld [vmem:[%s2055_s1 + $0x40] sm:$0xff]   ;;  %v1756_v22 = vld [vmem:[%s1894_s15 + $0x10] ss:$8 sps:$4 sm:$0xff]  }
  0x13   : > { %1582 = vmatprep.subr.bf16.mxu0 %v1734_v4  ;;  %1692 = vmatprep.subr.bf16.mxu1 %v1734_v4  ;;  %v1743_v15 = vld [vmem:[%s2055_s1 + $0x8] sm:$0xff]   ;;  %v1745_v17 = vld [vmem:[%s2055_s1] sm:$0xff]   ;;  %v1757_v23 = vld [vmem:[%s1894_s15 + $0x90] ss:$8 sps:$4 sm:$0xff]  }
  0x14   : > { %793 = vmatprep.mubr.bf16.mxu1 %v1751_v12  ;;  %v1758_v24 = vld [vmem:[%s1894_s15 + $0x24] ss:$8 sps:$4 sm:$0xff]   ;;  %v1762_v26 = vld [vmem:[%s1894_s15 + $0x20] ss:$8 sps:$4 sm:$0xff]   ;;  %v1764_v28 = vld [vmem:[%s1894_s15 + $0x34] ss:$8 sps:$4 sm:$0xff]  }
  0x15   : > { %v1760_v25 = vld [vmem:[%s1894_s15 + $0xa4] ss:$8 sps:$4 sm:$0xff]   ;;  %v1763_v27 = vld [vmem:[%s1894_s15 + $0xa0] ss:$8 sps:$4 sm:$0xff]   ;;  %v1766_v29 = vld [vmem:[%s1894_s15 + $0xb4] ss:$8 sps:$4 sm:$0xff]  }
  0x16   : > { %1583 = vmatpush3.bf16.msra.mxu0 %v1735_v5  ;;  %1700 = vmatpush3.bf16.msra.mxu1 %v1735_v5  ;;  %v1768_v30 = vld [vmem:[%s1894_s15 + $0x30] ss:$8 sps:$4 sm:$0xff]   ;;  %v1770_v32 = vld [vmem:[%s1894_s15 + $0x44] ss:$8 sps:$4 sm:$0xff]   ;;  %v1774_v34 = vld [vmem:[%s1894_s15 + $0x40] ss:$8 sps:$4 sm:$0xff]  }
  0x17   : > { %1584 = vmatprep.subr.bf16.mxu0 %v1736_v6  ;;  %1693 = vmatprep.subr.bf16.mxu1 %v1736_v6  ;;  %v1769_v31 = vld [vmem:[%s1894_s15 + $0xb0] ss:$8 sps:$4 sm:$0xff]   ;;  %v1772_v33 = vld [vmem:[%s1894_s15 + $0xc4] ss:$8 sps:$4 sm:$0xff]   ;;  %v1775_v35 = vld [vmem:[%s1894_s15 + $0xc0] ss:$8 sps:$4 sm:$0xff]  }
  0x18   : > { %v1776_v36 = vld [vmem:[%s1894_s15 + $0x54] ss:$8 sps:$4 sm:$0xff]   ;;  %v1780_v38 = vld [vmem:[%s1894_s15 + $0x50] ss:$8 sps:$4 sm:$0xff]   ;;  %v1782_v40 = vld [vmem:[%s1894_s15 + $0x64] ss:$8 sps:$4 sm:$0xff]  }
  0x19   : > { %v1778_v37 = vld [vmem:[%s1894_s15 + $0xd4] ss:$8 sps:$4 sm:$0xff]   ;;  %v1781_v39 = vld [vmem:[%s1894_s15 + $0xd0] ss:$8 sps:$4 sm:$0xff]   ;;  %v1784_v41 = vld [vmem:[%s1894_s15 + $0xe4] ss:$8 sps:$4 sm:$0xff]  }
  0x1a   : > { %1585 = vmatpush3.bf16.msra.mxu0 %v1737_v7  ;;  %1701 = vmatpush3.bf16.msra.mxu1 %v1737_v7  ;;  %v1786_v42 = vld [vmem:[%s1894_s15 + $0x60] ss:$8 sps:$4 sm:$0xff]   ;;  %v1788_v44 = vld [vmem:[%s1894_s15 + $0x74] ss:$8 sps:$4 sm:$0xff]   ;;  %v1792_v46 = vld [vmem:[%s1894_s15 + $0x70] ss:$8 sps:$4 sm:$0xff]  }
  0x1b   : > { %1586 = vmatprep.subr.bf16.mxu0 %v1738_v8  ;;  %1694 = vmatprep.subr.bf16.mxu1 %v1738_v8  ;;  %v1787_v43 = vld [vmem:[%s1894_s15 + $0xe0] ss:$8 sps:$4 sm:$0xff]   ;;  %v1790_v45 = vld [vmem:[%s1894_s15 + $0xf4] ss:$8 sps:$4 sm:$0xff]   ;;  %v1793_v47 = vld [vmem:[%s1894_s15 + $0xf0] ss:$8 sps:$4 sm:$0xff]   ;;  %s1971_s15 = scalar_lea.vmem %s2058_s4, %s1365_s12 }
  0x1c   : > { %v1952_v51 = vld [vmem:[%s2056_s2] ss:$0 sm:$0xff] }
  0x1d   : > { %v1959_v59 = vld [vmem:[%s2057_s3] ss:$0 sm:$0xff] }
  0x1e   : > { %1587 = vmatpush3.bf16.msra.mxu0 %v1739_v9  ;;  %1702 = vmatpush3.bf16.msra.mxu1 %v1739_v9 }
  0x1f   : > { %1588 = vmatprep.subr.bf16.mxu0 %v1740_v10  ;;  %1695 = vmatprep.subr.bf16.mxu1 %v1740_v10 }
  0x22   : > { %1589 = vmatpush3.bf16.msra.mxu0 %v1741_v13  ;;  %1703 = vmatpush3.bf16.msra.mxu1 %v1741_v13 }
  0x23   : > { %1590 = vmatprep.subr.bf16.mxu0 %v1742_v14  ;;  %1696 = vmatprep.subr.bf16.mxu1 %v1742_v14 }
  0x26   : > { %1591 = vmatpush3.bf16.msra.mxu0 %v1743_v15  ;;  %1704 = vmatpush3.bf16.msra.mxu1 %v1743_v15 }
  0x27   : > { %1592 = vmatprep.subr.bf16.mxu0 %v1744_v16  ;;  %1697 = vmatprep.subr.bf16.mxu1 %v1744_v16 }
  0x2a   : > { %1593 = vmatpush3.bf16.msra.mxu0 %v1745_v17  ;;  %1705 = vmatpush3.bf16.msra.mxu1 %v1745_v17 }
  0x2d   : > { %730 = vmatmul.mubr.bf16.vlgmr.msra.gmra.mxu0 %v1746_v18  ;;  %794 = vmatmul.mubr.bf16.vlgmr.msra.gmra.mxu1 %v1749_v19 }
  0x2e   : > { %737 = vmatprep.mubr.bf16.mxu0 %v1752_v20  ;;  %801 = vmatprep.mubr.bf16.mxu1 %v1754_v21 }
  0x35   : > { %738 = vmatmul.mubr.bf16.gmra.mxu0 %v1756_v22  ;;  %802 = vmatmul.mubr.bf16.gmra.mxu1 %v1757_v23 }
  0x36   : > { %745 = vmatprep.mubr.bf16.mxu0 %v1758_v24  ;;  %809 = vmatprep.mubr.bf16.mxu1 %v1760_v25 }
  0x3d   : > { %746 = vmatmul.mubr.bf16.gmra.mxu0 %v1762_v26  ;;  %810 = vmatmul.mubr.bf16.gmra.mxu1 %v1763_v27 }
  0x3e   : > { %753 = vmatprep.mubr.bf16.mxu0 %v1764_v28  ;;  %817 = vmatprep.mubr.bf16.mxu1 %v1766_v29 }
  0x45   : > { %754 = vmatmul.mubr.bf16.gmra.mxu0 %v1768_v30  ;;  %818 = vmatmul.mubr.bf16.gmra.mxu1 %v1769_v31 }
  0x46   : > { %761 = vmatprep.mubr.bf16.mxu0 %v1770_v32  ;;  %825 = vmatprep.mubr.bf16.mxu1 %v1772_v33 }
  0x4d   : > { %762 = vmatmul.mubr.bf16.gmra.mxu0 %v1774_v34  ;;  %826 = vmatmul.mubr.bf16.gmra.mxu1 %v1775_v35 }
  0x4e   : > { %769 = vmatprep.mubr.bf16.mxu0 %v1776_v36  ;;  %833 = vmatprep.mubr.bf16.mxu1 %v1778_v37 }
  0x55   : > { %770 = vmatmul.mubr.bf16.gmra.mxu0 %v1780_v38  ;;  %834 = vmatmul.mubr.bf16.gmra.mxu1 %v1781_v39 }
  0x56   : > { %777 = vmatprep.mubr.bf16.mxu0 %v1782_v40  ;;  %841 = vmatprep.mubr.bf16.mxu1 %v1784_v41 }
  0x5d   : > { %778 = vmatmul.mubr.bf16.gmra.mxu0 %v1786_v42  ;;  %842 = vmatmul.mubr.bf16.gmra.mxu1 %v1787_v43 }
  0x5e   : > { %785 = vmatprep.mubr.bf16.mxu0 %v1788_v44  ;;  %849 = vmatprep.mubr.bf16.mxu1 %v1790_v45 }
  0x65   : > { %786 = vmatmul.mubr.bf16.gmra.mxu0 %v1792_v46  ;;  %850 = vmatmul.mubr.bf16.gmra.mxu1 %v1793_v47 }
  0xed   : > { %v1594_v48 = vpop.f32.mrf.mxu0  ;;  %v1642_v49 = vpop.f32.mrf.mxu1 }
  0xef   : > { %v1595_v50 = vpop.f32.mrf.mxu0  ;;  %v1643_v52 = vpop.f32.mrf.mxu1 }
  0xf0   : > { %v1596_v53 = vadd.f32 %v1595_v50, %v1594_v48  ;;  %v1644_v54 = vadd.f32 %v1643_v52, %v1642_v49 }
  0xf1   : > { %v1597_v55 = vpop.f32.mrf.mxu0  ;;  %v1645_v56 = vpop.f32.mrf.mxu1 }
  0xf2   : > { %v964_v57 = vmul.f32 %v1596_v53, %v1952_v51  ;;  %v980_v58 = vmul.f32 %v1644_v54, %v1952_v51 }
  0xf3   : > { %v1598_v60 = vpop.f32.mrf.mxu0  ;;  %v1646_v61 = vpop.f32.mrf.mxu1 }
  0xf4   : > { %v1599_v62 = vadd.f32 %v1598_v60, %v1597_v55  ;;  %v1647_v63 = vadd.f32 %v1646_v61, %v1645_v56  ;;  %v1003_v2 = vadd.f32 %v1959_v59, %v964_v57  ;;  %v1019_v3 = vadd.f32 %v1959_v59, %v980_v58 }
  0xf5   : > { %v1600_v0 = vpop.f32.mrf.mxu0  ;;  %v1648_v1 = vpop.f32.mrf.mxu1 }
  0xf6   : > { %v965_v4 = vmul.f32 %v1599_v62, %v1952_v51  ;;  %v981_v5 = vmul.f32 %v1647_v63, %v1952_v51  ;;  %v1035_v14 = vmax.f32 %v1003_v2, 0.0  ;;  %v1051_v15 = vmax.f32 %v1019_v3, 0.0 }
  0xf7   : > { %v1601_v6 = vpop.f32.mrf.mxu0  ;;  %v1649_v7 = vpop.f32.mrf.mxu1 }
  0xf8   : > { %v1004_v8 = vadd.f32 %v1959_v59, %v965_v4  ;;  %v1020_v9 = vadd.f32 %v1959_v59, %v981_v5  ;;  %v1602_v10 = vadd.f32 %v1601_v6, %v1600_v0  ;;  %v1650_v11 = vadd.f32 %v1649_v7, %v1648_v1 }
  0xf9   : > { %v1603_v12 = vpop.f32.mrf.mxu0  ;;  %v1651_v13 = vpop.f32.mrf.mxu1 }
  0xfa   : > { %v1036_v16 = vmax.f32 %v1004_v8, 0.0  ;;  %v1052_v17 = vmax.f32 %v1020_v9, 0.0  ;;  %v966_v18 = vmul.f32 %v1602_v10, %v1952_v51  ;;  %v982_v19 = vmul.f32 %v1650_v11, %v1952_v51 }
  0xfb   : > { %v1604_v20 = vpop.f32.mrf.mxu0  ;;  %v1652_v21 = vpop.f32.mrf.mxu1 }
  0xfc   : > { %v1486_v22 = vpack.c.bf16 %v1036_v16, %v1035_v14  ;;  %v1526_v23 = vpack.c.bf16 %v1052_v17, %v1051_v15  ;;  %v1605_v24 = vadd.f32 %v1604_v20, %v1603_v12  ;;  %v1653_v25 = vadd.f32 %v1652_v21, %v1651_v13 }
  0xfd   : > { %v1606_v26 = vpop.f32.mrf.mxu0  ;;  %v1654_v27 = vpop.f32.mrf.mxu1  ;;  %v1005_v28 = vadd.f32 %v1959_v59, %v966_v18  ;;  %v1021_v29 = vadd.f32 %v1959_v59, %v982_v19 }
  0xfe   : > { %1487 = vst [vmem:[%s1971_s15] sm:$0xff] %v1486_v22   ;;  %1570 = vst [vmem:[%s1971_s15 + $0x40] sm:$0xff] %v1526_v23   ;;  %v967_v30 = vmul.f32 %v1605_v24, %v1952_v51  ;;  %v983_v31 = vmul.f32 %v1653_v25, %v1952_v51 }
  0xff   : > { %v1607_v32 = vpop.f32.mrf.mxu0  ;;  %v1655_v33 = vpop.f32.mrf.mxu1  ;;  %v1037_v42 = vmax.f32 %v1005_v28, 0.0  ;;  %v1053_v43 = vmax.f32 %v1021_v29, 0.0 }
 0x100   : > { %v1608_v34 = vadd.f32 %v1607_v32, %v1606_v26  ;;  %v1656_v35 = vadd.f32 %v1655_v33, %v1654_v27  ;;  %v1006_v36 = vadd.f32 %v1959_v59, %v967_v30  ;;  %v1022_v37 = vadd.f32 %v1959_v59, %v983_v31 }
 0x101   : > { %v1609_v38 = vpop.f32.mrf.mxu0  ;;  %v1657_v39 = vpop.f32.mrf.mxu1 }
 0x102   : > { %v968_v40 = vmul.f32 %v1608_v34, %v1952_v51  ;;  %v984_v41 = vmul.f32 %v1656_v35, %v1952_v51  ;;  %v1038_v44 = vmax.f32 %v1006_v36, 0.0  ;;  %v1054_v45 = vmax.f32 %v1022_v37, 0.0 }
 0x103   : > { %v1610_v46 = vpop.f32.mrf.mxu0  ;;  %v1658_v47 = vpop.f32.mrf.mxu1 }
 0x104   : > { %v1611_v48 = vadd.f32 %v1610_v46, %v1609_v38  ;;  %v1659_v49 = vadd.f32 %v1658_v47, %v1657_v39  ;;  %v1491_v50 = vpack.c.bf16 %v1038_v44, %v1037_v42  ;;  %v1531_v52 = vpack.c.bf16 %v1054_v45, %v1053_v43 }
 0x105   : > { %v1612_v53 = vpop.f32.mrf.mxu0  ;;  %v1660_v54 = vpop.f32.mrf.mxu1  ;;  %v1007_v55 = vadd.f32 %v1959_v59, %v968_v40  ;;  %v1023_v56 = vadd.f32 %v1959_v59, %v984_v41 }
 0x106   : > { %v969_v57 = vmul.f32 %v1611_v48, %v1952_v51  ;;  %v985_v58 = vmul.f32 %v1659_v49, %v1952_v51  ;;  %1563 = vst [vmem:[%s1971_s15 + $0x8] sm:$0xff] %v1491_v50   ;;  %1571 = vst [vmem:[%s1971_s15 + $0x48] sm:$0xff] %v1531_v52  }
 0x107   : > { %v1613_v60 = vpop.f32.mrf.mxu0  ;;  %v1661_v61 = vpop.f32.mrf.mxu1  ;;  %v1039_v4 = vmax.f32 %v1007_v55, 0.0  ;;  %v1055_v5 = vmax.f32 %v1023_v56, 0.0 }
 0x108   : > { %v1008_v62 = vadd.f32 %v1959_v59, %v969_v57  ;;  %v1024_v63 = vadd.f32 %v1959_v59, %v985_v58  ;;  %v1614_v0 = vadd.f32 %v1613_v60, %v1612_v53  ;;  %v1662_v1 = vadd.f32 %v1661_v61, %v1660_v54 }
 0x109   : > { %v1615_v2 = vpop.f32.mrf.mxu0  ;;  %v1663_v3 = vpop.f32.mrf.mxu1 }
 0x10a   : > { %v1040_v6 = vmax.f32 %v1008_v62, 0.0  ;;  %v1056_v7 = vmax.f32 %v1024_v63, 0.0  ;;  %v970_v8 = vmul.f32 %v1614_v0, %v1952_v51  ;;  %v986_v9 = vmul.f32 %v1662_v1, %v1952_v51 }
 0x10b   : > { %v1616_v10 = vpop.f32.mrf.mxu0  ;;  %v1664_v11 = vpop.f32.mrf.mxu1 }
 0x10c   : > { %v1496_v12 = vpack.c.bf16 %v1040_v6, %v1039_v4  ;;  %v1536_v13 = vpack.c.bf16 %v1056_v7, %v1055_v5  ;;  %v1617_v14 = vadd.f32 %v1616_v10, %v1615_v2  ;;  %v1665_v15 = vadd.f32 %v1664_v11, %v1663_v3 }
 0x10d   : > { %v1618_v16 = vpop.f32.mrf.mxu0  ;;  %v1666_v17 = vpop.f32.mrf.mxu1  ;;  %v1009_v18 = vadd.f32 %v1959_v59, %v970_v8  ;;  %v1025_v19 = vadd.f32 %v1959_v59, %v986_v9 }
 0x10e   : > { %1564 = vst [vmem:[%s1971_s15 + $0x10] sm:$0xff] %v1496_v12   ;;  %1572 = vst [vmem:[%s1971_s15 + $0x50] sm:$0xff] %v1536_v13   ;;  %v971_v20 = vmul.f32 %v1617_v14, %v1952_v51  ;;  %v987_v21 = vmul.f32 %v1665_v15, %v1952_v51 }
 0x10f   : > { %v1619_v22 = vpop.f32.mrf.mxu0  ;;  %v1667_v23 = vpop.f32.mrf.mxu1  ;;  %v1041_v32 = vmax.f32 %v1009_v18, 0.0  ;;  %v1057_v33 = vmax.f32 %v1025_v19, 0.0 }
 0x110   : > { %v1620_v24 = vadd.f32 %v1619_v22, %v1618_v16  ;;  %v1668_v25 = vadd.f32 %v1667_v23, %v1666_v17  ;;  %v1010_v26 = vadd.f32 %v1959_v59, %v971_v20  ;;  %v1026_v27 = vadd.f32 %v1959_v59, %v987_v21 }
 0x111   : > { %v1621_v28 = vpop.f32.mrf.mxu0  ;;  %v1669_v29 = vpop.f32.mrf.mxu1 }
 0x112   : > { %v972_v30 = vmul.f32 %v1620_v24, %v1952_v51  ;;  %v988_v31 = vmul.f32 %v1668_v25, %v1952_v51  ;;  %v1042_v34 = vmax.f32 %v1010_v26, 0.0  ;;  %v1058_v35 = vmax.f32 %v1026_v27, 0.0 }
 0x113   : > { %v1622_v36 = vpop.f32.mrf.mxu0  ;;  %v1670_v37 = vpop.f32.mrf.mxu1 }
 0x114   : > { %v1623_v38 = vadd.f32 %v1622_v36, %v1621_v28  ;;  %v1671_v39 = vadd.f32 %v1670_v37, %v1669_v29  ;;  %v1501_v40 = vpack.c.bf16 %v1042_v34, %v1041_v32  ;;  %v1541_v41 = vpack.c.bf16 %v1058_v35, %v1057_v33 }
 0x115   : > { %v1624_v42 = vpop.f32.mrf.mxu0  ;;  %v1672_v43 = vpop.f32.mrf.mxu1  ;;  %v1011_v44 = vadd.f32 %v1959_v59, %v972_v30  ;;  %v1027_v45 = vadd.f32 %v1959_v59, %v988_v31 }
 0x116   : > { %v973_v46 = vmul.f32 %v1623_v38, %v1952_v51  ;;  %v989_v47 = vmul.f32 %v1671_v39, %v1952_v51  ;;  %1565 = vst [vmem:[%s1971_s15 + $0x18] sm:$0xff] %v1501_v40   ;;  %1573 = vst [vmem:[%s1971_s15 + $0x58] sm:$0xff] %v1541_v41  }
 0x117   : > { %v1625_v48 = vpop.f32.mrf.mxu0  ;;  %v1673_v49 = vpop.f32.mrf.mxu1  ;;  %v1043_v57 = vmax.f32 %v1011_v44, 0.0  ;;  %v1059_v58 = vmax.f32 %v1027_v45, 0.0 }
 0x118   : > { %v1012_v50 = vadd.f32 %v1959_v59, %v973_v46  ;;  %v1028_v52 = vadd.f32 %v1959_v59, %v989_v47  ;;  %v1626_v53 = vadd.f32 %v1625_v48, %v1624_v42  ;;  %v1674_v54 = vadd.f32 %v1673_v49, %v1672_v43 }
 0x119   : > { %v1627_v55 = vpop.f32.mrf.mxu0  ;;  %v1675_v56 = vpop.f32.mrf.mxu1 }
 0x11a   : > { %v1044_v60 = vmax.f32 %v1012_v50, 0.0  ;;  %v1060_v61 = vmax.f32 %v1028_v52, 0.0  ;;  %v974_v62 = vmul.f32 %v1626_v53, %v1952_v51  ;;  %v990_v63 = vmul.f32 %v1674_v54, %v1952_v51 }
 0x11b   : > { %v1628_v0 = vpop.f32.mrf.mxu0  ;;  %v1676_v1 = vpop.f32.mrf.mxu1 }
 0x11c   : > { %v1506_v2 = vpack.c.bf16 %v1044_v60, %v1043_v57  ;;  %v1546_v3 = vpack.c.bf16 %v1060_v61, %v1059_v58  ;;  %v1629_v4 = vadd.f32 %v1628_v0, %v1627_v55  ;;  %v1677_v5 = vadd.f32 %v1676_v1, %v1675_v56 }
 0x11d   : > { %v1630_v6 = vpop.f32.mrf.mxu0  ;;  %v1678_v7 = vpop.f32.mrf.mxu1  ;;  %v1013_v8 = vadd.f32 %v1959_v59, %v974_v62  ;;  %v1029_v9 = vadd.f32 %v1959_v59, %v990_v63 }
 0x11e   : > { %1566 = vst [vmem:[%s1971_s15 + $0x20] sm:$0xff] %v1506_v2   ;;  %1574 = vst [vmem:[%s1971_s15 + $0x60] sm:$0xff] %v1546_v3   ;;  %v975_v10 = vmul.f32 %v1629_v4, %v1952_v51  ;;  %v991_v11 = vmul.f32 %v1677_v5, %v1952_v51 }
 0x11f   : > { %v1631_v12 = vpop.f32.mrf.mxu0  ;;  %v1679_v13 = vpop.f32.mrf.mxu1  ;;  %v1045_v22 = vmax.f32 %v1013_v8, 0.0  ;;  %v1061_v23 = vmax.f32 %v1029_v9, 0.0 }
 0x120   : > { %v1632_v14 = vadd.f32 %v1631_v12, %v1630_v6  ;;  %v1680_v15 = vadd.f32 %v1679_v13, %v1678_v7  ;;  %v1014_v16 = vadd.f32 %v1959_v59, %v975_v10  ;;  %v1030_v17 = vadd.f32 %v1959_v59, %v991_v11 }
 0x121   : > { %v1633_v18 = vpop.f32.mrf.mxu0  ;;  %v1681_v19 = vpop.f32.mrf.mxu1 }
 0x122   : > { %v976_v20 = vmul.f32 %v1632_v14, %v1952_v51  ;;  %v992_v21 = vmul.f32 %v1680_v15, %v1952_v51  ;;  %v1046_v24 = vmax.f32 %v1014_v16, 0.0  ;;  %v1062_v25 = vmax.f32 %v1030_v17, 0.0 }
 0x123   : > { %v1634_v26 = vpop.f32.mrf.mxu0  ;;  %v1682_v27 = vpop.f32.mrf.mxu1 }
 0x124   : > { %v1635_v28 = vadd.f32 %v1634_v26, %v1633_v18  ;;  %v1683_v29 = vadd.f32 %v1682_v27, %v1681_v19  ;;  %v1511_v30 = vpack.c.bf16 %v1046_v24, %v1045_v22  ;;  %v1551_v31 = vpack.c.bf16 %v1062_v25, %v1061_v23 }
 0x125   : > { %v1636_v32 = vpop.f32.mrf.mxu0  ;;  %v1684_v33 = vpop.f32.mrf.mxu1  ;;  %v1015_v34 = vadd.f32 %v1959_v59, %v976_v20  ;;  %v1031_v35 = vadd.f32 %v1959_v59, %v992_v21 }
 0x126   : > { %v977_v36 = vmul.f32 %v1635_v28, %v1952_v51  ;;  %v993_v37 = vmul.f32 %v1683_v29, %v1952_v51  ;;  %1567 = vst [vmem:[%s1971_s15 + $0x28] sm:$0xff] %v1511_v30   ;;  %1575 = vst [vmem:[%s1971_s15 + $0x68] sm:$0xff] %v1551_v31  }
 0x127   : > { %v1637_v38 = vpop.f32.mrf.mxu0  ;;  %v1685_v39 = vpop.f32.mrf.mxu1  ;;  %v1047_v46 = vmax.f32 %v1015_v34, 0.0  ;;  %v1063_v47 = vmax.f32 %v1031_v35, 0.0 }
 0x128   : > { %v1016_v40 = vadd.f32 %v1959_v59, %v977_v36  ;;  %v1032_v41 = vadd.f32 %v1959_v59, %v993_v37  ;;  %v1638_v42 = vadd.f32 %v1637_v38, %v1636_v32  ;;  %v1686_v43 = vadd.f32 %v1685_v39, %v1684_v33 }
 0x129   : > { %v1639_v44 = vpop.f32.mrf.mxu0  ;;  %v1687_v45 = vpop.f32.mrf.mxu1 }
 0x12a   : > { %v1048_v48 = vmax.f32 %v1016_v40, 0.0  ;;  %v1064_v49 = vmax.f32 %v1032_v41, 0.0  ;;  %v978_v50 = vmul.f32 %v1638_v42, %v1952_v51  ;;  %v994_v52 = vmul.f32 %v1686_v43, %v1952_v51 }
 0x12b   : > { %v1640_v53 = vpop.f32.mrf.mxu0  ;;  %v1688_v54 = vpop.f32.mrf.mxu1 }
 0x12c   : > { %v1516_v55 = vpack.c.bf16 %v1048_v48, %v1047_v46  ;;  %v1556_v56 = vpack.c.bf16 %v1064_v49, %v1063_v47  ;;  %v1641_v57 = vadd.f32 %v1640_v53, %v1639_v44  ;;  %v1689_v58 = vadd.f32 %v1688_v54, %v1687_v45 }
 0x12d   : > { %v1017_v60 = vadd.f32 %v1959_v59, %v978_v50  ;;  %v1033_v61 = vadd.f32 %v1959_v59, %v994_v52 }
 0x12e   : > { %1568 = vst [vmem:[%s1971_s15 + $0x30] sm:$0xff] %v1516_v55   ;;  %1576 = vst [vmem:[%s1971_s15 + $0x70] sm:$0xff] %v1556_v56   ;;  %v979_v62 = vmul.f32 %v1641_v57, %v1952_v51  ;;  %v995_v63 = vmul.f32 %v1689_v58, %v1952_v51 }
 0x12f   : > { %v1049_v2 = vmax.f32 %v1017_v60, 0.0  ;;  %v1065_v3 = vmax.f32 %v1033_v61, 0.0 }
 0x130   : > { %v1018_v0 = vadd.f32 %v1959_v59, %v979_v62  ;;  %v1034_v1 = vadd.f32 %v1959_v59, %v995_v63 }
 0x132   : > { %v1050_v4 = vmax.f32 %v1018_v0, 0.0  ;;  %v1066_v5 = vmax.f32 %v1034_v1, 0.0 }
 0x134   : > { %v1521_v6 = vpack.c.bf16 %v1050_v4, %v1049_v2  ;;  %v1561_v7 = vpack.c.bf16 %v1066_v5, %v1065_v3 }
 0x136   : > { %1569 = vst [vmem:[%s1971_s15 + $0x38] sm:$0xff] %v1521_v6   ;;  %1577 = vst [vmem:[%s1971_s15 + $0x78] sm:$0xff] %v1561_v7  }
 0x137 PF: > { %s14_s17 = sadd.s32 1, %s1816_s17   ;;  %s2059_s15 = smov %s1812_s16 }
 0x138   : > { %p11_p5 = scmp.ge.s32.totalorder %s14_s17, 4   ;;  %s2060_s16 = smov %s2062_s18 }
 0x13a   :  { %13 = sbr.rel (!%p11_p5) target bundleno = 2 (0x2), region = 83 }

</bundles_post_ra>
